<compile_context>
chip_gen: v6e
topology: v6e:2x2x1
jax: 0.10.0
libtpu: 0.0.40
codegen_flags: <defaults>
</compile_context>

<pallas_src>
import functools
from typing import NamedTuple

import jax
import jax.numpy as jnp
from jax.experimental import pallas as pl
from jax.experimental.pallas import tpu as pltpu


# ----------------------------------------------------------------------------
# Helpers
# ----------------------------------------------------------------------------
def _round_up(x: int, m: int) -> int:
    return (x + m - 1) // m * m


class ActorMeta(NamedTuple):
    state_dim: int
    hidden_size: int
    action_dim: int
    h_pad: int


def _activation(x, activation: str):
    if activation == "ReLU":
        return jnp.maximum(x, 0.0)
    return jnp.tanh(x)  # "Tanh"


# One-time probe: does this Pallas build accept BlockSpec(pipeline_mode=...)?
_PIPELINE_MODE_OK = None


def _pipeline_mode_supported() -> bool:
    global _PIPELINE_MODE_OK
    if _PIPELINE_MODE_OK is not None:
        return _PIPELINE_MODE_OK

    def _copy(x_ref, o_ref):
        o_ref[...] = x_ref[...]

    try:
        spec = pl.BlockSpec((8, 128), lambda i: (0, 0),
                            pipeline_mode=pl.Buffered(1))
        out = pl.pallas_call(
            _copy,
            out_shape=jax.ShapeDtypeStruct((8, 128), jnp.float32),
            grid=(2,),
            in_specs=[spec],
            out_specs=pl.BlockSpec((8, 128), lambda i: (0, 0)),
        )(jnp.ones((8, 128), jnp.float32))
        jax.block_until_ready(out)
        _PIPELINE_MODE_OK = bool(jnp.all(out == 1.0))
    except Exception:
        _PIPELINE_MODE_OK = False
    return _PIPELINE_MODE_OK


# ----------------------------------------------------------------------------
# Kernels
# ----------------------------------------------------------------------------
def _actor_kernel(x_ref, w1_ref, b1_ref, w2_ref, b2_ref, w3_ref, b3_ref,
                  out_ref, *, action_max, activation, compute_dtype):
    """Full MLP forward on one (TB, *) batch tile; weights resident in VMEM."""
    x = x_ref[...].astype(compute_dtype)

    h1 = jnp.dot(x, w1_ref[...], preferred_element_type=jnp.float32) + b1_ref[...]
    h1 = _activation(h1.astype(compute_dtype), activation)

    h2 = jnp.dot(h1, w2_ref[...], preferred_element_type=jnp.float32) + b2_ref[...]
    h2 = _activation(h2.astype(compute_dtype), activation)

    a = jnp.dot(h2, w3_ref[...], preferred_element_type=jnp.float32) + b3_ref[...]
    out_ref[...] = (action_max * jnp.tanh(a)).astype(out_ref.dtype)


def _actor_noise_kernel(x_ref, w1_ref, b1_ref, w2_ref, b2_ref, w3_ref, b3_ref,
                        noise_ref, out_ref, *, action_max, activation,
                        compute_dtype):
    """Same MLP, plus noise add and clamp to [-action_max, action_max]."""
    x = x_ref[...].astype(compute_dtype)

    h1 = jnp.dot(x, w1_ref[...], preferred_element_type=jnp.float32) + b1_ref[...]
    h1 = _activation(h1.astype(compute_dtype), activation)

    h2 = jnp.dot(h1, w2_ref[...], preferred_element_type=jnp.float32) + b2_ref[...]
    h2 = _activation(h2.astype(compute_dtype), activation)

    a = jnp.dot(h2, w3_ref[...], preferred_element_type=jnp.float32) + b3_ref[...]
    a = action_max * jnp.tanh(a) + noise_ref[...]
    out_ref[...] = jnp.clip(a, -action_max, action_max).astype(out_ref.dtype)


# ----------------------------------------------------------------------------
# Parameter prep: pad ONLY the hidden dim to a multiple of 128 (lanes) so the
# resident weights / intermediates are lane-dense; state_dim and action_dim
# stay un-padded (streamed tensors carry no padding).  Padded rows/cols are
# zero so results are unchanged.  Weights optionally cast to bf16 for the MXU.
# ----------------------------------------------------------------------------
def pad_actor_params(params, *, compute_dtype=jnp.bfloat16):
    S, H = params["w1"].shape
    A = params["w3"].shape[1]
    Hp = _round_up(H, 128)

    padded = {
        "w1": jnp.pad(params["w1"], ((0, 0), (0, Hp - H))).astype(compute_dtype),
        "b1": jnp.pad(params["b1"], ((0, 0), (0, Hp - H))).astype(jnp.float32),
        "w2": jnp.pad(params["w2"], ((0, Hp - H), (0, Hp - H))).astype(compute_dtype),
        "b2": jnp.pad(params["b2"], ((0, 0), (0, Hp - H))).astype(jnp.float32),
        "w3": jnp.pad(params["w3"], ((0, Hp - H), (0, 0))).astype(compute_dtype),
        "b3": params["b3"].astype(jnp.float32),
    }
    meta = ActorMeta(S, H, A, Hp)
    return padded, meta


# ----------------------------------------------------------------------------
# Wrapper
# ----------------------------------------------------------------------------
def actor_forward(padded_params, meta: ActorMeta, state, noise=None, *,
                  action_max, activation="ReLU", batch_tile=512,
                  stream_buffers=None):
    """Pallas implementation of Actor.forward.

    padded_params: output of pad_actor_params (hidden dim 128-aligned).
    state: [B, state_dim] float32.  noise: optional [B, action_dim] float32.
    stream_buffers: optional pipeline depth for the streamed state/noise/out
                    tiles (e.g. 3 on v5e to hide its slower HBM).
    """
    B, S = state.shape
    assert S == meta.state_dim
    A, Hp = meta.action_dim, meta.h_pad
    compute_dtype = padded_params["w1"].dtype

    weight_args = (padded_params["w1"], padded_params["b1"],
                   padded_params["w2"], padded_params["b2"],
                   padded_params["w3"], padded_params["b3"])
    weight_bytes = sum(int(w.size) * w.dtype.itemsize for w in weight_args)

    # Generation-aware VMEM capacity (64 MiB on v7x, 128 MiB on v5e/v6e).
    try:
        vmem_cap = int(pltpu.get_tpu_info().vmem_capacity_bytes)
    except Exception:
        vmem_cap = 64 * 1024 * 1024

    has_noise = noise is not None
    n_stream_bufs = int(stream_buffers) if stream_buffers else 2

    # --- Batch tile: as large as VMEM headroom allows, but never so large
    # --- that the grid has fewer than 2 steps (keep both v7x TCs busy).
    budget = int(0.4 * vmem_cap)
    per_row = (n_stream_bufs * 4 * (S + A * (2 if has_noise else 1))  # streams
               + 4 * 4 * Hp)                                          # intermediates
    avail = max(budget - 2 * weight_bytes - (4 << 20), 8 * per_row)
    tb_cap = max(8, (avail // per_row) // 8 * 8)
    TB = max(8, min(int(batch_tile), int(tb_cap)))
    TB = max(8, min(TB, _round_up((B + 1) // 2, 8)))   # >= 2 grid steps if B > 8
    TB = _round_up(TB, 8)
    B_pad = _round_up(B, TB)
    grid = (B_pad // TB,)

    state_p = state.astype(jnp.float32)
    if B_pad != B:
        state_p = jnp.pad(state_p, ((0, B_pad - B), (0, 0)))

    use_pm = _pipeline_mode_supported()

    # Weights/biases: whole-array blocks pinned at (0, 0) -> resident in VMEM.
    # Single-buffered (the block index never changes) when supported.
    def resident_spec(arr):
        if use_pm:
            return pl.BlockSpec(arr.shape, lambda i: (0, 0),
                                pipeline_mode=pl.Buffered(1))
        return pl.BlockSpec(arr.shape, lambda i: (0, 0))

    # Streamed batch tiles; block last dim == full (un-padded) feature dim.
    def stream_spec(cols):
        if use_pm and stream_buffers is not None and n_stream_bufs != 2:
            return pl.BlockSpec((TB, cols), lambda i: (i, 0),
                                pipeline_mode=pl.Buffered(n_stream_bufs))
        return pl.BlockSpec((TB, cols), lambda i: (i, 0))

    out_spec = stream_spec(A)
    out_shape = jax.ShapeDtypeStruct((B_pad, A), jnp.float32)

    if not has_noise:
        kernel = functools.partial(_actor_kernel,
                                   action_max=float(action_max),
                                   activation=activation,
                                   compute_dtype=compute_dtype)
        in_specs = [stream_spec(S)] + [resident_spec(w) for w in weight_args]
        args = (state_p,) + weight_args
    else:
        assert noise.shape == (B, A)
        # TODO(synk): optionally generate exploration noise in-kernel via
        # pltpu.prng_seed/stateful_normal; kept as a streamed input here to
        # match Actor.forward's explicit `noise` argument semantics.
        noise_p = noise.astype(jnp.float32)
        if B_pad != B:
            noise_p = jnp.pad(noise_p, ((0, B_pad - B), (0, 0)))
        kernel = functools.partial(_actor_noise_kernel,
                                   action_max=float(action_max),
                                   activation=activation,
                                   compute_dtype=compute_dtype)
        in_specs = ([stream_spec(S)] + [resident_spec(w) for w in weight_args]
                    + [stream_spec(A)])
        args = (state_p,) + weight_args + (noise_p,)

    # Cost estimate (helps XLA overlap surrounding ops with this kernel).
    flops = 2 * B_pad * (S * Hp + Hp * Hp + Hp * A)
    transcendentals = B_pad * A + (2 * B_pad * Hp if activation == "Tanh" else 0)
    bytes_accessed = (sum(int(a.size) * a.dtype.itemsize for a in args)
                      + B_pad * A * 4)
    cost = pl.CostEstimate(flops=int(flops),
                           transcendentals=int(transcendentals),
                           bytes_accessed=int(bytes_accessed))

    # VMEM budget: resident weights + N-buffered streamed tiles + headroom for
    # the f32 intermediates; capped at 60% of this chip's physical VMEM.
    weight_resident = weight_bytes * (1 if use_pm else 2)
    tile_bytes = n_stream_bufs * TB * 4 * (S + A + (A if has_noise else 0))
    interm_bytes = 4 * TB * Hp * 4
    needed = weight_resident + tile_bytes + interm_bytes
    vmem_limit = int(min(max(2 * needed + (8 << 20), 32 << 20),
                         int(0.6 * vmem_cap)))

    out = pl.pallas_call(
        kernel,
        out_shape=out_shape,
        grid=grid,
        in_specs=in_specs,
        out_specs=out_spec,
        compiler_params=pltpu.CompilerParams(
            dimension_semantics=("parallel",),  # batch axis -> megacore on v7x
            vmem_limit_bytes=vmem_limit),
        cost_estimate=cost,
    )(*args)

    return out[:B, :]


# ----------------------------------------------------------------------------
# Deterministic parameter init (matches PyTorch nn.Linear default: U(-k, k),
# k = 1/sqrt(fan_in)), stored as [in, out] so the kernel computes x @ W + b.
# ----------------------------------------------------------------------------
def init_actor_params(key, state_dim, hidden_size, action_dim):
    keys = jax.random.split(key, 6)

    def linear(kw, kb, fan_in, fan_out):
        bound = 1.0 / jnp.sqrt(jnp.float32(fan_in))
        w = jax.random.uniform(kw, (fan_in, fan_out), jnp.float32, -bound, bound)
        b = jax.random.uniform(kb, (1, fan_out), jnp.float32, -bound, bound)
        return w, b

    w1, b1 = linear(keys[0], keys[1], state_dim, hidden_size)
    w2, b2 = linear(keys[2], keys[3], hidden_size, hidden_size)
    w3, b3 = linear(keys[4], keys[5], hidden_size, action_dim)
    return {"w1": w1, "b1": b1, "w2": w2, "b2": b2, "w3": w3, "b3": b3}


# Pure-JAX reference for sanity checks.
def actor_ref(params, state, noise=None, *, action_max, activation="ReLU"):
    act = (lambda x: jnp.maximum(x, 0.0)) if activation == "ReLU" else jnp.tanh
    h = act(state @ params["w1"] + params["b1"])
    h = act(h @ params["w2"] + params["b2"])
    a = jnp.tanh(h @ params["w3"] + params["b3"])
    if noise is None:
        return action_max * a
    return jnp.clip(action_max * a + noise, -action_max, action_max)


if __name__ == "__main__":
    state_dim, hidden_size, action_dim = 16, 32, 8
    action_max = 2.0

    key = jax.random.PRNGKey(0)
    k_params, k_state, k_noise = jax.random.split(key, 3)
    params = init_actor_params(k_params, state_dim, hidden_size, action_dim)

    # ---- f32 compute, small batch: no-noise, noise+clamp, and Tanh paths ----
    batch = 4
    state = jax.random.normal(k_state, (batch, state_dim), jnp.float32)
    noise = 0.1 * jax.random.normal(k_noise, (batch, action_dim), jnp.float32)

    pparams_f32, meta_f32 = pad_actor_params(params, compute_dtype=jnp.float32)

    out = actor_forward(pparams_f32, meta_f32, state,
                        action_max=action_max, activation="ReLU")
    out = jax.block_until_ready(out)
    ref = actor_ref(params, state, action_max=action_max, activation="ReLU")
    assert out.shape == (batch, action_dim)
    assert jnp.allclose(out, ref, atol=1e-5), "no-noise path mismatch"

    out_n = actor_forward(pparams_f32, meta_f32, state, noise,
                          action_max=action_max, activation="ReLU")
    out_n = jax.block_until_ready(out_n)
    ref_n = actor_ref(params, state, noise,
                      action_max=action_max, activation="ReLU")
    assert jnp.allclose(out_n, ref_n, atol=1e-5), "noise path mismatch"

    out_t = actor_forward(pparams_f32, meta_f32, state,
                          action_max=action_max, activation="Tanh")
    out_t = jax.block_until_ready(out_t)
    ref_t = actor_ref(params, state, action_max=action_max, activation="Tanh")
    assert jnp.allclose(out_t, ref_t, atol=1e-5), "Tanh path mismatch"

    # ---- default bf16 MXU weights, multi-step grid (batch_tile=8 -> 3 tiles) ----
    batch2 = 20
    state2 = jax.random.normal(jax.random.PRNGKey(7), (batch2, state_dim),
                               jnp.float32)
    pparams_bf16, meta_bf16 = pad_actor_params(params)   # bf16 default
    out2 = actor_forward(pparams_bf16, meta_bf16, state2,
                         action_max=action_max, activation="ReLU",
                         batch_tile=8)
    out2 = jax.block_until_ready(out2)
    ref2 = actor_ref(params, state2, action_max=action_max, activation="ReLU")
    assert out2.shape == (batch2, action_dim)
    assert jnp.allclose(out2, ref2, atol=1e-1, rtol=5e-2), \
        "bf16 multi-tile path mismatch"

    # ---- larger batch, default tile (exercises VMEM-derived TB + >=2 grid
    # ---- steps for v7x megacore) with noise + clamp ----
    batch3 = 300
    state3 = jax.random.normal(jax.random.PRNGKey(11), (batch3, state_dim),
                               jnp.float32)
    noise3 = 0.1 * jax.random.normal(jax.random.PRNGKey(12),
                                     (batch3, action_dim), jnp.float32)
    out3 = actor_forward(pparams_bf16, meta_bf16, state3, noise3,
                         action_max=action_max, activation="ReLU")
    out3 = jax.block_until_ready(out3)
    ref3 = actor_ref(params, state3, noise3,
                     action_max=action_max, activation="ReLU")
    assert out3.shape == (batch3, action_dim)
    assert jnp.allclose(out3, ref3, atol=1e-1, rtol=5e-2), \
        "bf16 large-batch noise path mismatch"

    print("KERNEL_OK")
</pallas_src>

<mosaic_0001>
module attributes {stable_mosaic.version = 11 : i64} {
  func.func @_copy(%arg0: i32, %arg1: memref<8x128xf32, #tpu.memory_space<vmem>>, %arg2: memref<8x128xf32, #tpu.memory_space<vmem>>) attributes {dimension_semantics = [#tpu.dimension_semantics<arbitrary>], iteration_bounds = array<i64: 2>, scalar_prefetch = 0 : i64, scratch_operands = 0 : i64, tpu.core_type = #tpu.core_type<tc>, window_params = [{pipeline_mode = #tpu.pipeline_mode<synchronous>, transform_indices = @transform_0, window_bounds = array<i64: 8, 128>}, {pipeline_mode = #tpu.pipeline_mode<synchronous>, transform_indices = @transform_1, window_bounds = array<i64: 8, 128>}]} {
    %c0 = arith.constant 0 : index
    %c0_0 = arith.constant 0 : index
    %0 = vector.load %arg1[%c0, %c0_0] : memref<8x128xf32, #tpu.memory_space<vmem>>, vector<8x128xf32>
    %c0_1 = arith.constant 0 : index
    %c0_2 = arith.constant 0 : index
    %1 = vector.load %arg2[%c0_1, %c0_2] : memref<8x128xf32, #tpu.memory_space<vmem>>, vector<8x128xf32>
    tpu.vector_store %arg2[%c0_1, %c0_2], %0 {strides = array<i32>} : memref<8x128xf32, #tpu.memory_space<vmem>>, vector<8x128xf32>,
    return
  }
  func.func @transform_0(%arg0: i32) -> (i32, i32) {
    %c0_i32 = arith.constant 0 : i32
    %c0_i32_0 = arith.constant 0 : i32
    %c0_i32_1 = arith.constant 0 : i32
    return %c0_i32, %c0_i32_0 : i32, i32
  }
  func.func @transform_1(%arg0: i32) -> (i32, i32) {
    %c0_i32 = arith.constant 0 : i32
    %c0_i32_0 = arith.constant 0 : i32
    %c0_i32_1 = arith.constant 0 : i32
    return %c0_i32, %c0_i32_0 : i32, i32
  }
}

module attributes {stable_mosaic.version = 11 : i64} {
  func.func @_actor_kernel(%arg0: i32, %arg1: memref<8x16xf32, #tpu.memory_space<vmem>>, %arg2: memref<16x128xf32, #tpu.memory_space<vmem>>, %arg3: memref<1x128xf32, #tpu.memory_space<vmem>>, %arg4: memref<128x128xf32, #tpu.memory_space<vmem>>, %arg5: memref<1x128xf32, #tpu.memory_space<vmem>>, %arg6: memref<128x8xf32, #tpu.memory_space<vmem>>, %arg7: memref<1x8xf32, #tpu.memory_space<vmem>>, %arg8: memref<8x8xf32, #tpu.memory_space<vmem>>) attributes {dimension_semantics = [#tpu.dimension_semantics<parallel>], iteration_bounds = array<i64: 1>, scalar_prefetch = 0 : i64, scratch_operands = 0 : i64, tpu.core_type = #tpu.core_type<tc>, window_params = [{transform_indices = @transform_0, window_bounds = array<i64: 8, 16>}, {pipeline_mode = #tpu.pipeline_mode<synchronous>, transform_indices = @transform_1, window_bounds = array<i64: 16, 128>}, {pipeline_mode = #tpu.pipeline_mode<synchronous>, transform_indices = @transform_2, window_bounds = array<i64: 1, 128>}, {pipeline_mode = #tpu.pipeline_mode<synchronous>, transform_indices = @transform_3, window_bounds = array<i64: 128, 128>}, {pipeline_mode = #tpu.pipeline_mode<synchronous>, transform_indices = @transform_4, window_bounds = array<i64: 1, 128>}, {pipeline_mode = #tpu.pipeline_mode<synchronous>, transform_indices = @transform_5, window_bounds = array<i64: 128, 8>}, {pipeline_mode = #tpu.pipeline_mode<synchronous>, transform_indices = @transform_6, window_bounds = array<i64: 1, 8>}, {transform_indices = @transform_7, window_bounds = array<i64: 8, 8>}]} {
    %c0 = arith.constant 0 : index
    %c0_0 = arith.constant 0 : index
    %0 = vector.load %arg1[%c0, %c0_0] : memref<8x16xf32, #tpu.memory_space<vmem>>, vector<8x16xf32>
    %c0_1 = arith.constant 0 : index
    %c0_2 = arith.constant 0 : index
    %1 = vector.load %arg2[%c0_1, %c0_2] : memref<16x128xf32, #tpu.memory_space<vmem>>, vector<16x128xf32>
    %cst = arith.constant dense<0.000000e+00> : vector<8x128xf32>
    %2 = tpu.matmul %0, %1, %cst {dimension_numbers = #tpu.dot_dimension_numbers<[1], [0], [0], [1], [0, 0, 1, 1], [], []>} : vector<8x16xf32>, vector<16x128xf32>, vector<8x128xf32> -> vector<8x128xf32>
    %c0_3 = arith.constant 0 : index
    %c0_4 = arith.constant 0 : index
    %3 = vector.load %arg3[%c0_3, %c0_4] : memref<1x128xf32, #tpu.memory_space<vmem>>, vector<1x128xf32>
    %4 = vector.broadcast %3 : vector<1x128xf32> to vector<8x128xf32>
    %5 = arith.addf %2, %4 : vector<8x128xf32>
    %cst_5 = arith.constant 0.000000e+00 : f32
    %6 = vector.broadcast %cst_5 : f32 to vector<8x128xf32>
    %7 = arith.maximumf %5, %6 : vector<8x128xf32>
    %c0_6 = arith.constant 0 : index
    %c0_7 = arith.constant 0 : index
    %8 = vector.load %arg4[%c0_6, %c0_7] : memref<128x128xf32, #tpu.memory_space<vmem>>, vector<128x128xf32>
    %cst_8 = arith.constant dense<0.000000e+00> : vector<8x128xf32>
    %9 = tpu.matmul %7, %8, %cst_8 {dimension_numbers = #tpu.dot_dimension_numbers<[1], [0], [0], [1], [0, 0, 1, 1], [], []>} : vector<8x128xf32>, vector<128x128xf32>, vector<8x128xf32> -> vector<8x128xf32>
    %c0_9 = arith.constant 0 : index
    %c0_10 = arith.constant 0 : index
    %10 = vector.load %arg5[%c0_9, %c0_10] : memref<1x128xf32, #tpu.memory_space<vmem>>, vector<1x128xf32>
    %11 = vector.broadcast %10 : vector<1x128xf32> to vector<8x128xf32>
    %12 = arith.addf %9, %11 : vector<8x128xf32>
    %cst_11 = arith.constant 0.000000e+00 : f32
    %13 = vector.broadcast %cst_11 : f32 to vector<8x128xf32>
    %14 = arith.maximumf %12, %13 : vector<8x128xf32>
    %c0_12 = arith.constant 0 : index
    %c0_13 = arith.constant 0 : index
    %15 = vector.load %arg6[%c0_12, %c0_13] : memref<128x8xf32, #tpu.memory_space<vmem>>, vector<128x8xf32>
    %cst_14 = arith.constant dense<0.000000e+00> : vector<8x8xf32>
    %16 = tpu.matmul %14, %15, %cst_14 {dimension_numbers = #tpu.dot_dimension_numbers<[1], [0], [0], [1], [0, 0, 1, 1], [], []>} : vector<8x128xf32>, vector<128x8xf32>, vector<8x8xf32> -> vector<8x8xf32>
    %c0_15 = arith.constant 0 : index
    %c0_16 = arith.constant 0 : index
    %17 = vector.load %arg7[%c0_15, %c0_16] : memref<1x8xf32, #tpu.memory_space<vmem>>, vector<1x8xf32>
    %18 = vector.broadcast %17 : vector<1x8xf32> to vector<8x8xf32>
    %19 = arith.addf %16, %18 : vector<8x8xf32>
    %20 = math.tanh %19 : vector<8x8xf32>
    %cst_17 = arith.constant 2.000000e+00 : f32
    %21 = vector.broadcast %cst_17 : f32 to vector<8x8xf32>
    %22 = arith.mulf %21, %20 : vector<8x8xf32>
    %c0_18 = arith.constant 0 : index
    %c0_19 = arith.constant 0 : index
    %23 = vector.load %arg8[%c0_18, %c0_19] : memref<8x8xf32, #tpu.memory_space<vmem>>, vector<8x8xf32>
    tpu.vector_store %arg8[%c0_18, %c0_19], %22 {strides = array<i32>} : memref<8x8xf32, #tpu.memory_space<vmem>>, vector<8x8xf32>,
    return
  }
  func.func @transform_0(%arg0: i32) -> (i32, i32) {
    %c0_i32 = arith.constant 0 : i32
    %c0_i32_0 = arith.constant 0 : i32
    return %arg0, %c0_i32 : i32, i32
  }
  func.func @transform_1(%arg0: i32) -> (i32, i32) {
    %c0_i32 = arith.constant 0 : i32
    %c0_i32_0 = arith.constant 0 : i32
    %c0_i32_1 = arith.constant 0 : i32
    return %c0_i32, %c0_i32_0 : i32, i32
  }
  func.func @transform_2(%arg0: i32) -> (i32, i32) {
    %c0_i32 = arith.constant 0 : i32
    %c0_i32_0 = arith.constant 0 : i32
    %c0_i32_1 = arith.constant 0 : i32
    return %c0_i32, %c0_i32_0 : i32, i32
  }
  func.func @transform_3(%arg0: i32) -> (i32, i32) {
    %c0_i32 = arith.constant 0 : i32
    %c0_i32_0 = arith.constant 0 : i32
    %c0_i32_1 = arith.constant 0 : i32
    return %c0_i32, %c0_i32_0 : i32, i32
  }
  func.func @transform_4(%arg0: i32) -> (i32, i32) {
    %c0_i32 = arith.constant 0 : i32
    %c0_i32_0 = arith.constant 0 : i32
    %c0_i32_1 = arith.constant 0 : i32
    return %c0_i32, %c0_i32_0 : i32, i32
  }
  func.func @transform_5(%arg0: i32) -> (i32, i32) {
    %c0_i32 = arith.constant 0 : i32
    %c0_i32_0 = arith.constant 0 : i32
    %c0_i32_1 = arith.constant 0 : i32
    return %c0_i32, %c0_i32_0 : i32, i32
  }
  func.func @transform_6(%arg0: i32) -> (i32, i32) {
    %c0_i32 = arith.constant 0 : i32
    %c0_i32_0 = arith.constant 0 : i32
    %c0_i32_1 = arith.constant 0 : i32
    return %c0_i32, %c0_i32_0 : i32, i32
  }
  func.func @transform_7(%arg0: i32) -> (i32, i32) {
    %c0_i32 = arith.constant 0 : i32
    %c0_i32_0 = arith.constant 0 : i32
    return %arg0, %c0_i32 : i32, i32
  }
}

</mosaic_0001>

<bundles_post_ra>
// kernel: tpu_custom_call.1
= control target key start
LH: loop header
LB: loop body
LE: loop exit
PB: predicated region body
PF: predicated region fallthrough
CT: control target
= control target key end

     0   :  { %6 = vsyncpa [#allocation3], 0  ;;  %s304_s0 = inlined_call_operand.hbm [shape: f32[8,128], index: 0, kind: input, shape index: {}]   ;;  %s305_s1 = inlined_call_operand.hbm [shape: f32[8,128], index: 1, kind: output, shape index: {}]  }
   0x1   :  { %7 = vsyncpa [#allocation4], 0  ;;  %s257_s6 = smov 0  }
   0x2 LB: > { %s144_s7 = sadd.s32 4294967295, %s243_s6   ;;  %p145_p0 = scmp.ge.s32.totalorder %s243_s6, 1  ;;  %s243_s6 = sphi %s257_s6, %s13_s6  }
   0x3   : > { %p60_p1 = scmp.lt.s32.totalorder %s243_s6, 3  ;;  %p269_p3 = scmp.eq.s32.totalorder %s144_s7, 0 }
   0x4   : > { %s245_s10 = smov [#allocation2]  }
   0x5   : > { %p265_p2 = pnand %p145_p0, %p60_p1  ;;  %s73_s11 = sshll.u32 %s245_s10, 4  ;;  %s74_s11 = int_to_ptr.vmem [resolvable:$true] %s73_s11 }
   0x6   : > { %s190_s12 = scalar_lea.vmem %s74_s11, 128  ;;  %p198_p10 = scmp.lt.s32.totalorder %s74_s11, %s74_s11 }
   0x7   : > { %p161_p4 = pneg %p265_p2  ;;  %p191_p7 = scmp.ne.s32.totalorder %s74_s11, %s190_s12 }
   0x8   : > { %p199_p11 = scmp.lt.s32.totalorder %s190_s12, %s190_s12 }
   0x9   : > { %p162_p5 = pnand %p269_p3, %p161_p4 }
   0xa   : > { %p200_p12 = por %p199_p11, %p198_p10 }
   0xb   : > { %p181_p6 = pneg %p162_p5 }
   0xd   : > { %p193_p8 = pnand %p191_p7, %p181_p6 }
   0xf   : > { %p194_p9 = pneg %p193_p8 }
  0x11   : > { %p201_p13 = pnand %p200_p12, %p194_p9 }
  0x13   : > { %204 = shalt.err (!%p201_p13)
}
  0x14   : > { %164 = dma.hbm_to_vmem [thread:$0]  (!%p162_p5), %s304_s0, 128, %s74_s11, [#allocation3]  }
  0x15   : > { %86 = sbr.rel (%p265_p2) target bundleno = 42 (0x2a), region = 24 }
  0x1a   : > { %234 = dma.done.wait (%p269_p3), [#allocation3], 128  }
  0x1b   : > { %236 = vsyncadd (%p269_p3), [#allocation3], 4294967168  ;;  %s246_s15 = smov [#allocation5]   ;;  %p286_p0 = scmp.eq.s32.totalorder %s144_s7, 1  ;;  %v96_v0 = vld [vmem:[#allocation2] sm:$0xff] }
  0x1c   : > { %s105_s16 = sshll.u32 %s246_s15, 4  ;;  %97 = vst [vmem:[#allocation5] sm:$0xff] %v96_v0  ;;  %s106_s16 = int_to_ptr.vmem [resolvable:$true] %s105_s16 }
  0x1d   : > { %s205_s18 = scalar_lea.vmem %s106_s16, 128  ;;  %p212_p5 = scmp.lt.s32.totalorder %s106_s16, %s106_s16 }
  0x1e   : > { %p206_p1 = scmp.ne.s32.totalorder %s106_s16, %s205_s18  ;;  %p213_p6 = scmp.lt.s32.totalorder %s205_s18, %s205_s18 }
  0x20   : > { %p207_p2 = pnand %p206_p1, %p286_p0  ;;  %p214_p7 = por %p213_p6, %p212_p5 }
  0x22   : > { %p208_p4 = pneg %p207_p2 }
  0x24   : > { %p215_p8 = pnand %p214_p7, %p208_p4 }
  0x26   : > { %218 = shalt.err (!%p215_p8)
}
  0x27   : > { %158 = dma.vmem_to_hbm [thread:$0]  (%p286_p0), %s106_s16, 128, %s305_s1, [#allocation4]  }
  0x28   : > { %238 = dma.done.wait (%p286_p0), [#allocation4], 128  }
  0x29   : > { %240 = vsyncadd (%p286_p0), [#allocation4], 4294967168 }
  0x2a PF: > { %s13_s6 = sadd.s32 1, %s243_s6  }
  0x2b   : > { %p10_p3 = scmp.ge.s32.totalorder %s13_s6, 4  }
  0x2d   :  { %12 = sbr.rel (!%p10_p3) target bundleno = 2 (0x2), region = 53 }
  0x32   :  { %118 = vsyncpa [#allocation3], 1 }
  0x33   :  { %120 = vsyncpa [#allocation3 + $0x1], 1 }
  0x34   :  { %121 = vsyncpa [#allocation4], 1 }
  0x35   :  { %123 = vsyncpa [#allocation4 + $0x1], 1 }

// kernel: tpu_custom_call.1
= control target key start
LH: loop header
LB: loop body
LE: loop exit
PB: predicated region body
PF: predicated region fallthrough
CT: control target
= control target key end

     0   :  { %12 = vsyncpa [#allocation3], 0  ;;  %s739_s0 = inlined_call_operand.vmem [shape: f32[8,16], index: 0, kind: input, shape index: {}]   ;;  %s740_s1 = inlined_call_operand.hbm [shape: f32[16,128], index: 1, kind: input, shape index: {}]   ;;  %s741_s2 = inlined_call_operand.vmem [shape: f32[1,128], index: 2, kind: input, shape index: {}]   ;;  %s742_s3 = inlined_call_operand.vmem [shape: f32[128,128], index: 3, kind: input, shape index: {}]   ;;  %s743_s4 = inlined_call_operand.hbm [shape: f32[1,128], index: 4, kind: input, shape index: {}]   ;;  %s744_s5 = inlined_call_operand.vmem [shape: f32[128,8], index: 5, kind: input, shape index: {}]   ;;  %s745_s6 = inlined_call_operand.vmem [shape: f32[1,8], index: 6, kind: input, shape index: {}]   ;;  %s746_s7 = inlined_call_operand.hbm [shape: f32[8,8], index: 7, kind: output, shape index: {}]  }
   0x1   :  { %13 = vsyncpa [#allocation6], 0 }
   0x2   :  { %14 = vsyncpa [#allocation4], 0  ;;  %s538_s24 = smov [#allocation2]  }
   0x3   :  { %s22_s25 = sshll.u32 %s538_s24, 4  ;;  %s23_s25 = int_to_ptr.vmem [resolvable:$true] %s22_s25 }
   0x4   :  { %s480_s26 = scalar_lea.vmem %s23_s25, 256  ;;  %p485_p1 = scmp.lt.s32.totalorder %s23_s25, %s23_s25 }
   0x5   :  { %p481_p0 = scmp.ne.s32.totalorder %s23_s25, %s480_s26  ;;  %p486_p2 = scmp.lt.s32.totalorder %s480_s26, %s480_s26 }
   0x7   :  { %p487_p3 = por %p486_p2, %p485_p1 }
   0x9   :  { %p488_p4 = pnand %p487_p3, %p481_p0 }
   0xb   :  { %491 = shalt.err (!%p488_p4)
}
   0xc   :  { %s539_s27 = smov 128   ;;  %s540_s28 = smov 8  }
   0xd   :  { %28 = dma.hbm_to_vmem [thread:$0]  %s740_s1, 256, %s23_s25, [#allocation3], %s539_s27, %s539_s27, %s540_s28  }
   0xe   :  { %s541_s8 = smov [#allocation5]  }
   0xf   :  { %s39_s9 = sshll.u32 %s541_s8, 4  ;;  %s40_s9 = int_to_ptr.vmem [resolvable:$true] %s39_s9 }
  0x10   :  { %s500_s10 = scalar_lea.vmem %s40_s9, 16  ;;  %s504_s11 = scalar_lea.vmem %s40_s9, 32 }
  0x11   :  { %p501_p5 = scmp.ne.s32.totalorder %s40_s9, %s500_s10  ;;  %p505_p6 = scmp.lt.s32.totalorder %s40_s9, %s40_s9 }
  0x12   :  { %p506_p7 = scmp.lt.s32.totalorder %s504_s11, %s500_s10 }
  0x14   :  { %p507_p8 = por %p506_p7, %p505_p6 }
  0x16   :  { %p508_p9 = pnand %p507_p8, %p501_p5 }
  0x18   :  { %511 = shalt.err (!%p508_p9)
}
  0x19   :  { %42 = dma.hbm_to_vmem [thread:$0]  %s743_s4, 16, %s40_s9, [#allocation6]  }
  0x1a   :  { %532 = dma.done.wait [#allocation3], 256  }
  0x1b   :  { %533 = vsyncadd [#allocation3], 4294967040 }
  0x1c   :  { %534 = dma.done.wait [#allocation6], 16  }
  0x1d   :  { %535 = vsyncadd [#allocation6], 4294967280  ;;  %v542_v0 = vmov 0.0   ;;  %vm543_vm0 = vmmov 0   ;;  %v55_v1 = vld [vmem:[#allocation2 + $0x8] sm:$0xff]  ;;  %v54_v2 = vld [vmem:[#allocation2] sm:$0xff] }
  0x1e   :  { %386 = vmatprep.subr.mxu0 %v542_v0  ;;  %390 = vmatprep.mubr.msk.f32.mxu0 %vm543_vm0, %v542_v0  ;;  %v53_v3 = vld [vmem:[%s739_s0] sm:$0xff]  ;;  %vm63_vm1 = vcmask 130048   ;;  %v153_v4 = vld [vmem:[%s742_s3 + $0x78] sm:$0xff]  ;;  %v152_v5 = vld [vmem:[%s742_s3 + $0x70] sm:$0xff]  ;;  %s544_s26 = smov [#allocation7]   ;;  %vm327_vm2 = vcmask 64512  }
  0x1f   :  { %393 = vmatprep.subr.mxu1 %v542_v0  ;;  %425 = vmatprep.mubr.msk.f32.mxu1 %vm543_vm0, %v542_v0  ;;  %v151_v6 = vld [vmem:[%s742_s3 + $0x68] sm:$0xff]  ;;  %v150_v7 = vld [vmem:[%s742_s3 + $0x60] sm:$0xff]  ;;  %v149_v8 = vld [vmem:[%s742_s3 + $0x58] sm:$0xff]  ;;  %s335_s27 = sshll.u32 %s544_s26, 4  ;;  %s336_s27 = int_to_ptr.vmem [resolvable:$true] %s335_s27 }
  0x20   :  { %387 = vmatpush3.msra.mxu0 %v55_v1  ;;  %394 = vmatpush3.msra.mxu1 %v153_v4  ;;  %v148_v9 = vld [vmem:[%s742_s3 + $0x50] sm:$0xff]  ;;  %v147_v10 = vld [vmem:[%s742_s3 + $0x48] sm:$0xff]  ;;  %v146_v11 = vld [vmem:[%s742_s3 + $0x40] sm:$0xff]  ;;  %p517_p11 = scmp.lt.s32.totalorder %s336_s27, %s336_s27 }
  0x21   :  { %388 = vmatprep.subr.mxu0 %v542_v0  ;;  %395 = vmatprep.subr.mxu1 %v542_v0  ;;  %v145_v12 = vld [vmem:[%s742_s3 + $0x38] sm:$0xff]  ;;  %v144_v13 = vld [vmem:[%s742_s3 + $0x30] sm:$0xff]  ;;  %v143_v14 = vld [vmem:[%s742_s3 + $0x28] sm:$0xff] }
  0x22   :  { %389 = vmatpush3.msra.mxu0 %v54_v2  ;;  %396 = vmatpush3.msra.mxu1 %v152_v5  ;;  %v142_v15 = vld [vmem:[%s742_s3 + $0x20] sm:$0xff]  ;;  %v141_v16 = vld [vmem:[%s742_s3 + $0x18] sm:$0xff]  ;;  %v140_v17 = vld [vmem:[%s742_s3 + $0x10] sm:$0xff] }
  0x23   :  { %391 = vmatmul.mubr.msk.f32.vlgmr.msra.gmra.mxu0 %vm63_vm1, %v53_v3  ;;  %397 = vmatprep.subr.mxu1 %v542_v0  ;;  %v139_v18 = vld [vmem:[%s742_s3 + $0x8] sm:$0xff]  ;;  %v138_v19 = vld [vmem:[%s742_s3] sm:$0xff]  ;;  %v247_v20 = vld [vmem:[%s744_s5 + $0x78] sm:$0xff] }
  0x24   :  { %428 = vmatprep.subr.mxu0 %v542_v0  ;;  %398 = vmatpush3.msra.mxu1 %v151_v6  ;;  %v246_v21 = vld [vmem:[%s744_s5 + $0x70] sm:$0xff]  ;;  %v245_v22 = vld [vmem:[%s744_s5 + $0x68] sm:$0xff]  ;;  %v244_v23 = vld [vmem:[%s744_s5 + $0x60] sm:$0xff] }
  0x25   :  { %460 = vmatprep.mubr.msk.f32.mxu0 %vm543_vm0, %v542_v0  ;;  %399 = vmatprep.subr.mxu1 %v542_v0  ;;  %v243_v24 = vld [vmem:[%s744_s5 + $0x58] sm:$0xff]  ;;  %v242_v25 = vld [vmem:[%s744_s5 + $0x50] sm:$0xff]  ;;  %v241_v26 = vld [vmem:[%s744_s5 + $0x48] sm:$0xff] }
  0x26   :  { %400 = vmatpush3.msra.mxu1 %v150_v7  ;;  %429 = vmatpush3.msra.mxu0 %v247_v20  ;;  %v240_v27 = vld [vmem:[%s744_s5 + $0x40] sm:$0xff]  ;;  %v239_v28 = vld [vmem:[%s744_s5 + $0x38] sm:$0xff]  ;;  %v238_v29 = vld [vmem:[%s744_s5 + $0x30] sm:$0xff] }
  0x27   :  { %401 = vmatprep.subr.mxu1 %v542_v0  ;;  %430 = vmatprep.subr.mxu0 %v542_v0  ;;  %v237_v30 = vld [vmem:[%s744_s5 + $0x28] sm:$0xff]  ;;  %v236_v31 = vld [vmem:[%s744_s5 + $0x20] sm:$0xff]  ;;  %v235_v32 = vld [vmem:[%s744_s5 + $0x18] sm:$0xff] }
  0x28   :  { %402 = vmatpush3.msra.mxu1 %v149_v8  ;;  %431 = vmatpush3.msra.mxu0 %v246_v21  ;;  %v345_v33 = vld [vmem:[%s741_s2] ss:$0 sm:$0xff]  ;;  %v234_v38 = vld [vmem:[%s744_s5 + $0x10] sm:$0xff]  ;;  %v233_v39 = vld [vmem:[%s744_s5 + $0x8] sm:$0xff] }
  0x29   :  { %403 = vmatprep.subr.mxu1 %v542_v0  ;;  %432 = vmatprep.subr.mxu0 %v542_v0  ;;  %v232_v40 = vld [vmem:[%s744_s5] sm:$0xff]  ;;  %v347_v41 = vld [vmem:[#allocation5] ss:$0 sm:$0xff]  ;;  %s512_s5 = scalar_lea.vmem %s336_s27, 128 }
  0x2a   :  { %404 = vmatpush3.msra.mxu1 %v148_v9  ;;  %433 = vmatpush3.msra.mxu0 %v245_v22  ;;  %v348_v46 = vld [vmem:[%s745_s6] ss:$0 sm:$0xff]  ;;  %p513_p10 = scmp.ne.s32.totalorder %s336_s27, %s512_s5  ;;  %p518_p12 = scmp.lt.s32.totalorder %s512_s5, %s512_s5 }
  0x2b   :  { %405 = vmatprep.subr.mxu1 %v542_v0  ;;  %434 = vmatprep.subr.mxu0 %v542_v0 }
  0x2c   :  { %406 = vmatpush3.msra.mxu1 %v147_v10  ;;  %435 = vmatpush3.msra.mxu0 %v244_v23  ;;  %p519_p13 = por %p518_p12, %p517_p11 }
  0x2d   :  { %407 = vmatprep.subr.mxu1 %v542_v0  ;;  %436 = vmatprep.subr.mxu0 %v542_v0 }
  0x2e   :  { %408 = vmatpush3.msra.mxu1 %v146_v11  ;;  %437 = vmatpush3.msra.mxu0 %v243_v24  ;;  %p520_p0 = pnand %p519_p13, %p513_p10 }
  0x2f   :  { %409 = vmatprep.subr.mxu1 %v542_v0  ;;  %438 = vmatprep.subr.mxu0 %v542_v0 }
  0x30   :  { %410 = vmatpush3.msra.mxu1 %v145_v12  ;;  %439 = vmatpush3.msra.mxu0 %v242_v25 }
  0x31   :  { %411 = vmatprep.subr.mxu1 %v542_v0  ;;  %440 = vmatprep.subr.mxu0 %v542_v0 }
  0x32   :  { %412 = vmatpush3.msra.mxu1 %v144_v13  ;;  %441 = vmatpush3.msra.mxu0 %v241_v26 }
  0x33   :  { %413 = vmatprep.subr.mxu1 %v542_v0  ;;  %442 = vmatprep.subr.mxu0 %v542_v0 }
  0x34   :  { %414 = vmatpush3.msra.mxu1 %v143_v14  ;;  %443 = vmatpush3.msra.mxu0 %v240_v27 }
  0x35   :  { %415 = vmatprep.subr.mxu1 %v542_v0  ;;  %444 = vmatprep.subr.mxu0 %v542_v0 }
  0x36   :  { %416 = vmatpush3.msra.mxu1 %v142_v15  ;;  %445 = vmatpush3.msra.mxu0 %v239_v28 }
  0x37   :  { %417 = vmatprep.subr.mxu1 %v542_v0  ;;  %446 = vmatprep.subr.mxu0 %v542_v0 }
  0x38   :  { %418 = vmatpush3.msra.mxu1 %v141_v16  ;;  %447 = vmatpush3.msra.mxu0 %v238_v29 }
  0x39   :  { %419 = vmatprep.subr.mxu1 %v542_v0  ;;  %448 = vmatprep.subr.mxu0 %v542_v0 }
  0x3a   :  { %420 = vmatpush3.msra.mxu1 %v140_v17  ;;  %449 = vmatpush3.msra.mxu0 %v237_v30 }
  0x3b   :  { %421 = vmatprep.subr.mxu1 %v542_v0  ;;  %450 = vmatprep.subr.mxu0 %v542_v0 }
  0x3c   :  { %422 = vmatpush3.msra.mxu1 %v139_v18  ;;  %451 = vmatpush3.msra.mxu0 %v236_v31 }
  0x3d   :  { %423 = vmatprep.subr.mxu1 %v542_v0  ;;  %452 = vmatprep.subr.mxu0 %v542_v0 }
  0x3e   :  { %424 = vmatpush3.msra.mxu1 %v138_v19  ;;  %453 = vmatpush3.msra.mxu0 %v235_v32 }
  0x3f   :  { %454 = vmatprep.subr.mxu0 %v542_v0 }
  0x40   :  { %455 = vmatpush3.msra.mxu0 %v234_v38 }
  0x41   :  { %456 = vmatprep.subr.mxu0 %v542_v0 }
  0x42   :  { %457 = vmatpush3.msra.mxu0 %v233_v39 }
  0x43   :  { %458 = vmatprep.subr.mxu0 %v542_v0 }
  0x44   :  { %459 = vmatpush3.msra.mxu0 %v232_v40 }
  0xe3   :  { %v133_v34 = vpop.f32.mrf.mxu0 }
  0xe4   :  { %v134_v35 = vadd.f32 %v345_v33, %v133_v34 }
  0xe5   :  { %v392_v36 = vpop.f32.mrf.mxu0 }
  0xe6   :  { %v137_v37 = vmax.f32 %v134_v35, 0.0 }
  0xe8   :  { %426 = vmatmul.mubr.f32.vlgmr.msra.gmra.mxu1 %v137_v37 }
 0x1a8   :  { %v227_v42 = vpop.f32.mrf.mxu1 }
 0x1a9   :  { %v228_v43 = vadd.f32 %v347_v41, %v227_v42 }
 0x1aa   :  { %v427_v44 = vpop.f32.mrf.mxu1 }
 0x1ab   :  { %v231_v45 = vmax.f32 %v228_v43, 0.0 }
 0x1ad   :  { %461 = vmatmul.mubr.f32.vlgmr.msra.gmra.mxu0 %v231_v45 }
 0x26d   :  { %v321_v47 = vpop.f32.mrf.mxu0 }
 0x26e   :  { %v322_v48 = vadd.f32 %v348_v46, %v321_v47 }
 0x26f   :  { %v462_v49 = vpop.f32.mrf.mxu0 }
 0x270   :  { %470 = vtanh.f32 %v322_v48 }
 0x27d   :  { %v471_v50 = vpop.eup %470 }
 0x27e   :  { %v326_v51 = vmul.f32 2.0, %v471_v50 }
 0x280   :  { %328 = vst.msk [vmem:[#allocation7] sm:$0xff] %vm327_vm2, %v326_v51 }
 0x281   :  { %523 = shalt.err (!%p520_p0)
}
 0x282   :  { %338 = dma.vmem_to_hbm [thread:$0]  %s336_s27, 128, %s746_s7, [#allocation4]  }
 0x283   :  { %536 = dma.done.wait [#allocation4], 128  }
 0x284   :  { %537 = vsyncadd [#allocation4], 4294967168 }
 0x285   :  { %342 = vsyncpa [#allocation3], 1 }
 0x286   :  { %343 = vsyncpa [#allocation6], 1 }
 0x287   :  { %344 = vsyncpa [#allocation4], 1 }

</bundles_post_ra>
